<compile_context>
chip_gen: v7x
topology: tpu7x:2x2x1
jax: 0.10.0
libtpu: 0.0.40
codegen_flags: <defaults>
</compile_context>

<pallas_src>
import jax
import jax.numpy as jnp
from jax.experimental import pallas as pl
from jax.experimental.pallas import tpu as pltpu

LN_EPS = 1e-5
LANE = 128


def _round_up(x, m):
    return ((x + m - 1) // m) * m


def _choose_tiling(batch, max_tile_m):
    """Pick (padded_batch, tile_m): tiny batches -> one 8-row-aligned tile;
    larger batches -> >= 2 tiles (both v7x TCs), each at most max_tile_m rows."""
    bp = _round_up(batch, 8)
    if bp <= 8:
        return bp, bp
    tile = min(max_tile_m, _round_up((bp + 1) // 2, 8))
    bp = _round_up(bp, tile)
    return bp, tile


def _layernorm(h, gamma, beta):
    # h: f32 (tile_m, F); gamma/beta: f32 (1, F).  F is the real hidden width
    # (hidden dims are never padded), so no masking is needed.  Two-pass
    # variance matches the PyTorch reference numerically.
    mu = jnp.mean(h, axis=-1, keepdims=True)
    d = h - mu
    var = jnp.mean(d * d, axis=-1, keepdims=True)
    return d * (jax.lax.rsqrt(var + LN_EPS) * gamma) + beta


def actor_kernel(x_ref, w1_ref, v1_ref, w2_ref, v2_ref, w3_ref, b3_ref,
                 out_ref):
    # fc1 (+ b1 folded into the padded K rows) -> ln1 -> relu
    h1 = jnp.dot(x_ref[...], w1_ref[...], preferred_element_type=jnp.float32)
    h1 = jnp.maximum(_layernorm(h1, v1_ref[0:1, :], v1_ref[1:2, :]), 0.0)

    # fc2 -> +b2 -> ln2 -> relu
    h2 = jnp.dot(h1.astype(jnp.bfloat16), w2_ref[...],
                 preferred_element_type=jnp.float32)
    h2 = h2 + v2_ref[0:1, :]
    h2 = jnp.maximum(_layernorm(h2, v2_ref[1:2, :], v2_ref[2:3, :]), 0.0)

    # fc3 -> tanh  (full-lane output slab; padded columns give tanh(0)=0)
    out = jnp.dot(h2.astype(jnp.bfloat16), w3_ref[...],
                  preferred_element_type=jnp.float32)
    out_ref[...] = jnp.tanh(out + b3_ref[...])


def make_actor_forward(params, *, max_tile_m=512):
    """Prepare padded bf16 weights once and return a jitted forward(state)."""
    state_dim, fc1 = params["w1"].shape
    fc2 = params["w2"].shape[1]
    action_dim = params["w3"].shape[1]

    if fc1 % LANE or fc2 % LANE:
        # LayerNorm statistics run over the full hidden width, so hidden dims
        # must not be padded; require lane multiples instead.
        raise ValueError("fc1_dims / fc2_dims must be multiples of 128")

    kp = _round_up(state_dim + 1, LANE)   # +1 = ones column for the b1 fold
    np_ = _round_up(action_dim, LANE)     # padded lane-dense output width

    # ---- one-time weight preparation (NOT on the per-call path) ----
    w1_p = (jnp.zeros((kp, fc1), jnp.float32)
            .at[:state_dim, :].set(params["w1"])
            .at[state_dim, :].set(params["b1"][0])       # bias row
            .astype(jnp.bfloat16))
    w2_p = params["w2"].astype(jnp.bfloat16)
    w3_p = (jnp.zeros((fc2, np_), jnp.float32)
            .at[:, :action_dim].set(params["w3"])
            .astype(jnp.bfloat16))
    b3_p = jnp.zeros((1, np_), jnp.float32).at[:, :action_dim].set(params["b3"])
    v1 = jnp.concatenate([params["g1"], params["be1"]], axis=0)          # (2, fc1)
    v2 = jnp.concatenate([params["b2"], params["g2"], params["be2"]], 0)  # (3, fc2)

    w1_p, w2_p, w3_p, b3_p, v1, v2 = jax.block_until_ready(
        (w1_p, w2_p, w3_p, b3_p, v1, v2))

    def forward(state):
        batch = state.shape[0]
        bp, tile_m = _choose_tiling(batch, max_tile_m)

        # Fused augment + pad of the state: ones column for the b1 fold, zero
        # pad up to (bp, kp).  Zero K-rows contribute nothing to fc1; padded
        # batch rows are sliced off below (LN eps keeps them finite).
        state_aug = jnp.concatenate(
            [state.astype(jnp.bfloat16), jnp.ones((batch, 1), jnp.bfloat16)],
            axis=1)
        state_p = jnp.pad(state_aug,
                          ((0, bp - batch), (0, kp - (state_dim + 1))))

        def row_spec(feat):        # batch-tiled arrays (state / output)
            return pl.BlockSpec((tile_m, feat), lambda i: (i, 0))

        def const_spec(shape):     # weights / LN params: VMEM-resident
            return pl.BlockSpec(shape, lambda i: (0, 0))

        in_specs = [
            row_spec(kp),
            const_spec((kp, fc1)), const_spec((2, fc1)),
            const_spec((fc1, fc2)), const_spec((3, fc2)),
            const_spec((fc2, np_)), const_spec((1, np_)),
        ]

        flops = 2 * bp * (kp * fc1 + fc1 * fc2 + fc2 * np_)
        transcendentals = bp * (2 + np_)       # 2 rsqrt/row + tanh per lane
        bytes_accessed = (state_p.size * 2
                          + (w1_p.size + w2_p.size + w3_p.size) * 2
                          + 4 * (2 * fc1 + 3 * fc2 + np_)
                          + bp * np_ * 4)

        out_p = pl.pallas_call(
            actor_kernel,
            out_shape=jax.ShapeDtypeStruct((bp, np_), jnp.float32),
            grid=(bp // tile_m,),
            in_specs=in_specs,
            out_specs=row_spec(np_),
            compiler_params=pltpu.CompilerParams(
                # Independent batch tiles -> v7x shards them across both TCs.
                # Resident footprint (bf16 weights + double-buffered tiles) is
                # well under the 32 MiB default scoped VMEM on every chip.
                dimension_semantics=("parallel",)),
            cost_estimate=pl.CostEstimate(
                flops=int(flops),
                transcendentals=int(transcendentals),
                bytes_accessed=int(bytes_accessed)),
        )(state_p, w1_p, v1, w2_p, v2, w3_p, b3_p)

        return out_p[:batch, :action_dim]

    return jax.jit(forward)


def init_actor_params(key, state_dim, action_dim, fc1_dims=256, fc2_dims=256):
    """Mirrors Actor.reset_parameters deterministically.

    fanin_uniform uses tensor.size(0) of the PyTorch (out, in) weight, i.e.
    bound = 1/sqrt(out_features).  fc3 ~ U(-0.003, 0.003).  Biases zero,
    LayerNorm gamma=1, beta=0.  Weights stored transposed as (in, out) f32.
    """
    k1, k2, k3 = jax.random.split(key, 3)
    b1 = 1.0 / jnp.sqrt(jnp.float32(fc1_dims))
    b2 = 1.0 / jnp.sqrt(jnp.float32(fc2_dims))
    return {
        "w1": jax.random.uniform(k1, (state_dim, fc1_dims), jnp.float32, -b1, b1),
        "b1": jnp.zeros((1, fc1_dims), jnp.float32),
        "g1": jnp.ones((1, fc1_dims), jnp.float32),
        "be1": jnp.zeros((1, fc1_dims), jnp.float32),
        "w2": jax.random.uniform(k2, (fc1_dims, fc2_dims), jnp.float32, -b2, b2),
        "b2": jnp.zeros((1, fc2_dims), jnp.float32),
        "g2": jnp.ones((1, fc2_dims), jnp.float32),
        "be2": jnp.zeros((1, fc2_dims), jnp.float32),
        "w3": jax.random.uniform(k3, (fc1_dims if False else fc2_dims, action_dim),
                                 jnp.float32, -0.003, 0.003),
        "b3": jnp.zeros((1, action_dim), jnp.float32),
    }


def actor_reference(state, params):
    """Pure-JAX f32 reference of the same forward pass (sanity check)."""
    def ln(h, g, b):
        mu = jnp.mean(h, axis=-1, keepdims=True)
        var = jnp.mean((h - mu) ** 2, axis=-1, keepdims=True)
        return (h - mu) * jax.lax.rsqrt(var + LN_EPS) * g + b
    h1 = jax.nn.relu(ln(state @ params["w1"] + params["b1"],
                        params["g1"], params["be1"]))
    h2 = jax.nn.relu(ln(h1 @ params["w2"] + params["b2"],
                        params["g2"], params["be2"]))
    return jnp.tanh(h2 @ params["w3"] + params["b3"])


if __name__ == "__main__":
    key = jax.random.PRNGKey(0)
    k_param, k_state = jax.random.split(key)

    batch, state_dim, action_dim = 8, 16, 8
    fc1_dims = fc2_dims = 128  # small hidden sizes for this synthetic run
    # (Sizing note: on v6e/v7x a 256-wide hidden layer runs the 256x256 MXU at
    #  full occupancy for nearly the same cycle count; no kernel change needed.)

    params = init_actor_params(k_param, state_dim, action_dim,
                               fc1_dims, fc2_dims)
    state = jax.random.normal(k_state, (batch, state_dim), jnp.float32)

    actor_apply = make_actor_forward(params)
    action = jax.block_until_ready(actor_apply(state))

    # sanity: shape, tanh range, agreement with the f32 reference
    assert action.shape == (batch, action_dim)
    assert bool(jnp.all(jnp.abs(action) <= 1.0))
    ref = actor_reference(state, params)
    assert bool(jnp.max(jnp.abs(action - ref)) < 2e-2), "mismatch vs reference"
    print("KERNEL_OK")
</pallas_src>

<mosaic_0001>
module attributes {stable_mosaic.version = 11 : i64} {
  func.func @actor_kernel(%arg0: i32, %arg1: memref<8x128xbf16, #tpu.memory_space<vmem>>, %arg2: memref<128x128xbf16, #tpu.memory_space<vmem>>, %arg3: memref<2x128xf32, #tpu.memory_space<vmem>>, %arg4: memref<128x128xbf16, #tpu.memory_space<vmem>>, %arg5: memref<3x128xf32, #tpu.memory_space<vmem>>, %arg6: memref<128x128xbf16, #tpu.memory_space<vmem>>, %arg7: memref<1x128xf32, #tpu.memory_space<vmem>>, %arg8: memref<8x128xf32, #tpu.memory_space<vmem>>) attributes {dimension_semantics = [#tpu.dimension_semantics<parallel>], iteration_bounds = array<i64: 1>, scalar_prefetch = 0 : i64, scratch_operands = 0 : i64, tpu.core_type = #tpu.core_type<tc>, window_params = [{transform_indices = @transform_0, window_bounds = array<i64: 8, 128>}, {pipeline_mode = #tpu.pipeline_mode<synchronous>, transform_indices = @transform_1, window_bounds = array<i64: 128, 128>}, {pipeline_mode = #tpu.pipeline_mode<synchronous>, transform_indices = @transform_2, window_bounds = array<i64: 2, 128>}, {pipeline_mode = #tpu.pipeline_mode<synchronous>, transform_indices = @transform_3, window_bounds = array<i64: 128, 128>}, {pipeline_mode = #tpu.pipeline_mode<synchronous>, transform_indices = @transform_4, window_bounds = array<i64: 3, 128>}, {pipeline_mode = #tpu.pipeline_mode<synchronous>, transform_indices = @transform_5, window_bounds = array<i64: 128, 128>}, {pipeline_mode = #tpu.pipeline_mode<synchronous>, transform_indices = @transform_6, window_bounds = array<i64: 1, 128>}, {transform_indices = @transform_7, window_bounds = array<i64: 8, 128>}]} {
    %c0 = arith.constant 0 : index
    %c0_0 = arith.constant 0 : index
    %0 = vector.load %arg1[%c0, %c0_0] : memref<8x128xbf16, #tpu.memory_space<vmem>>, vector<8x128xbf16>
    %c0_1 = arith.constant 0 : index
    %c0_2 = arith.constant 0 : index
    %1 = vector.load %arg2[%c0_1, %c0_2] : memref<128x128xbf16, #tpu.memory_space<vmem>>, vector<128x128xbf16>
    %cst = arith.constant dense<0.000000e+00> : vector<8x128xf32>
    %2 = tpu.matmul %0, %1, %cst {dimension_numbers = #tpu.dot_dimension_numbers<[1], [0], [0], [1], [0, 0, 1, 1], [], []>} : vector<8x128xbf16>, vector<128x128xbf16>, vector<8x128xf32> -> vector<8x128xf32>
    %c0_3 = arith.constant 0 : index
    %c0_4 = arith.constant 0 : index
    %3 = vector.load %arg3[%c0_3, %c0_4] : memref<2x128xf32, #tpu.memory_space<vmem>>, vector<1x128xf32>
    %c1 = arith.constant 1 : index
    %c0_5 = arith.constant 0 : index
    %4 = vector.load %arg3[%c1, %c0_5] : memref<2x128xf32, #tpu.memory_space<vmem>>, vector<1x128xf32>
    %cst_6 = arith.constant dense<0.000000e+00> : vector<8xf32>
    %5 = vector.multi_reduction <add>, %2, %cst_6 [1] : vector<8x128xf32> to vector<8xf32>
    %6 = vector.shape_cast %5 : vector<8xf32> to vector<8x1xf32>
    %cst_7 = arith.constant 1.280000e+02 : f32
    %7 = vector.broadcast %cst_7 : f32 to vector<8x1xf32>
    %8 = arith.divf %6, %7 : vector<8x1xf32>
    %9 = vector.broadcast %8 : vector<8x1xf32> to vector<8x128xf32>
    %10 = arith.subf %2, %9 : vector<8x128xf32>
    %11 = arith.mulf %10, %10 : vector<8x128xf32>
    %cst_8 = arith.constant dense<0.000000e+00> : vector<8xf32>
    %12 = vector.multi_reduction <add>, %11, %cst_8 [1] : vector<8x128xf32> to vector<8xf32>
    %13 = vector.shape_cast %12 : vector<8xf32> to vector<8x1xf32>
    %cst_9 = arith.constant 1.280000e+02 : f32
    %14 = vector.broadcast %cst_9 : f32 to vector<8x1xf32>
    %15 = arith.divf %13, %14 : vector<8x1xf32>
    %cst_10 = arith.constant 9.99999974E-6 : f32
    %16 = vector.broadcast %cst_10 : f32 to vector<8x1xf32>
    %17 = arith.addf %15, %16 : vector<8x1xf32>
    %18 = math.rsqrt %17 : vector<8x1xf32>
    %19 = vector.broadcast %18 : vector<8x1xf32> to vector<8x128xf32>
    %20 = vector.broadcast %3 : vector<1x128xf32> to vector<8x128xf32>
    %21 = arith.mulf %19, %20 : vector<8x128xf32>
    %22 = arith.mulf %10, %21 : vector<8x128xf32>
    %23 = vector.broadcast %4 : vector<1x128xf32> to vector<8x128xf32>
    %24 = arith.addf %22, %23 : vector<8x128xf32>
    %cst_11 = arith.constant 0.000000e+00 : f32
    %25 = vector.broadcast %cst_11 : f32 to vector<8x128xf32>
    %26 = arith.maximumf %24, %25 : vector<8x128xf32>
    %27 = arith.truncf %26 : vector<8x128xf32> to vector<8x128xbf16>
    %c0_12 = arith.constant 0 : index
    %c0_13 = arith.constant 0 : index
    %28 = vector.load %arg4[%c0_12, %c0_13] : memref<128x128xbf16, #tpu.memory_space<vmem>>, vector<128x128xbf16>
    %cst_14 = arith.constant dense<0.000000e+00> : vector<8x128xf32>
    %29 = tpu.matmul %27, %28, %cst_14 {dimension_numbers = #tpu.dot_dimension_numbers<[1], [0], [0], [1], [0, 0, 1, 1], [], []>} : vector<8x128xbf16>, vector<128x128xbf16>, vector<8x128xf32> -> vector<8x128xf32>
    %c0_15 = arith.constant 0 : index
    %c0_16 = arith.constant 0 : index
    %30 = vector.load %arg5[%c0_15, %c0_16] : memref<3x128xf32, #tpu.memory_space<vmem>>, vector<1x128xf32>
    %31 = vector.broadcast %30 : vector<1x128xf32> to vector<8x128xf32>
    %32 = arith.addf %29, %31 : vector<8x128xf32>
    %c1_17 = arith.constant 1 : index
    %c0_18 = arith.constant 0 : index
    %33 = vector.load %arg5[%c1_17, %c0_18] : memref<3x128xf32, #tpu.memory_space<vmem>>, vector<1x128xf32>
    %c2 = arith.constant 2 : index
    %c0_19 = arith.constant 0 : index
    %34 = vector.load %arg5[%c2, %c0_19] : memref<3x128xf32, #tpu.memory_space<vmem>>, vector<1x128xf32>
    %cst_20 = arith.constant dense<0.000000e+00> : vector<8xf32>
    %35 = vector.multi_reduction <add>, %32, %cst_20 [1] : vector<8x128xf32> to vector<8xf32>
    %36 = vector.shape_cast %35 : vector<8xf32> to vector<8x1xf32>
    %cst_21 = arith.constant 1.280000e+02 : f32
    %37 = vector.broadcast %cst_21 : f32 to vector<8x1xf32>
    %38 = arith.divf %36, %37 : vector<8x1xf32>
    %39 = vector.broadcast %38 : vector<8x1xf32> to vector<8x128xf32>
    %40 = arith.subf %32, %39 : vector<8x128xf32>
    %41 = arith.mulf %40, %40 : vector<8x128xf32>
    %cst_22 = arith.constant dense<0.000000e+00> : vector<8xf32>
    %42 = vector.multi_reduction <add>, %41, %cst_22 [1] : vector<8x128xf32> to vector<8xf32>
    %43 = vector.shape_cast %42 : vector<8xf32> to vector<8x1xf32>
    %cst_23 = arith.constant 1.280000e+02 : f32
    %44 = vector.broadcast %cst_23 : f32 to vector<8x1xf32>
    %45 = arith.divf %43, %44 : vector<8x1xf32>
    %cst_24 = arith.constant 9.99999974E-6 : f32
    %46 = vector.broadcast %cst_24 : f32 to vector<8x1xf32>
    %47 = arith.addf %45, %46 : vector<8x1xf32>
    %48 = math.rsqrt %47 : vector<8x1xf32>
    %49 = vector.broadcast %48 : vector<8x1xf32> to vector<8x128xf32>
    %50 = vector.broadcast %33 : vector<1x128xf32> to vector<8x128xf32>
    %51 = arith.mulf %49, %50 : vector<8x128xf32>
    %52 = arith.mulf %40, %51 : vector<8x128xf32>
    %53 = vector.broadcast %34 : vector<1x128xf32> to vector<8x128xf32>
    %54 = arith.addf %52, %53 : vector<8x128xf32>
    %cst_25 = arith.constant 0.000000e+00 : f32
    %55 = vector.broadcast %cst_25 : f32 to vector<8x128xf32>
    %56 = arith.maximumf %54, %55 : vector<8x128xf32>
    %57 = arith.truncf %56 : vector<8x128xf32> to vector<8x128xbf16>
    %c0_26 = arith.constant 0 : index
    %c0_27 = arith.constant 0 : index
    %58 = vector.load %arg6[%c0_26, %c0_27] : memref<128x128xbf16, #tpu.memory_space<vmem>>, vector<128x128xbf16>
    %cst_28 = arith.constant dense<0.000000e+00> : vector<8x128xf32>
    %59 = tpu.matmul %57, %58, %cst_28 {dimension_numbers = #tpu.dot_dimension_numbers<[1], [0], [0], [1], [0, 0, 1, 1], [], []>} : vector<8x128xbf16>, vector<128x128xbf16>, vector<8x128xf32> -> vector<8x128xf32>
    %c0_29 = arith.constant 0 : index
    %c0_30 = arith.constant 0 : index
    %60 = vector.load %arg7[%c0_29, %c0_30] : memref<1x128xf32, #tpu.memory_space<vmem>>, vector<1x128xf32>
    %61 = vector.broadcast %60 : vector<1x128xf32> to vector<8x128xf32>
    %62 = arith.addf %59, %61 : vector<8x128xf32>
    %63 = math.tanh %62 : vector<8x128xf32>
    %c0_31 = arith.constant 0 : index
    %c0_32 = arith.constant 0 : index
    %64 = vector.load %arg8[%c0_31, %c0_32] : memref<8x128xf32, #tpu.memory_space<vmem>>, vector<8x128xf32>
    tpu.vector_store %arg8[%c0_31, %c0_32], %63 {strides = array<i32>} : memref<8x128xf32, #tpu.memory_space<vmem>>, vector<8x128xf32>,
    return
  }
  func.func @transform_0(%arg0: i32) -> (i32, i32) {
    %c0_i32 = arith.constant 0 : i32
    %c0_i32_0 = arith.constant 0 : i32
    return %arg0, %c0_i32 : i32, i32
  }
  func.func @transform_1(%arg0: i32) -> (i32, i32) {
    %c0_i32 = arith.constant 0 : i32
    %c0_i32_0 = arith.constant 0 : i32
    %c0_i32_1 = arith.constant 0 : i32
    return %c0_i32, %c0_i32_0 : i32, i32
  }
  func.func @transform_2(%arg0: i32) -> (i32, i32) {
    %c0_i32 = arith.constant 0 : i32
    %c0_i32_0 = arith.constant 0 : i32
    %c0_i32_1 = arith.constant 0 : i32
    return %c0_i32, %c0_i32_0 : i32, i32
  }
  func.func @transform_3(%arg0: i32) -> (i32, i32) {
    %c0_i32 = arith.constant 0 : i32
    %c0_i32_0 = arith.constant 0 : i32
    %c0_i32_1 = arith.constant 0 : i32
    return %c0_i32, %c0_i32_0 : i32, i32
  }
  func.func @transform_4(%arg0: i32) -> (i32, i32) {
    %c0_i32 = arith.constant 0 : i32
    %c0_i32_0 = arith.constant 0 : i32
    %c0_i32_1 = arith.constant 0 : i32
    return %c0_i32, %c0_i32_0 : i32, i32
  }
  func.func @transform_5(%arg0: i32) -> (i32, i32) {
    %c0_i32 = arith.constant 0 : i32
    %c0_i32_0 = arith.constant 0 : i32
    %c0_i32_1 = arith.constant 0 : i32
    return %c0_i32, %c0_i32_0 : i32, i32
  }
  func.func @transform_6(%arg0: i32) -> (i32, i32) {
    %c0_i32 = arith.constant 0 : i32
    %c0_i32_0 = arith.constant 0 : i32
    %c0_i32_1 = arith.constant 0 : i32
    return %c0_i32, %c0_i32_0 : i32, i32
  }
  func.func @transform_7(%arg0: i32) -> (i32, i32) {
    %c0_i32 = arith.constant 0 : i32
    %c0_i32_0 = arith.constant 0 : i32
    return %arg0, %c0_i32 : i32, i32
  }
}

</mosaic_0001>

<bundles_post_ra>
// kernel: forward.1
= control target key start
LH: loop header
LB: loop body
LE: loop exit
PB: predicated region body
PF: predicated region fallthrough
CT: control target
= control target key end

     0   :  { %12 = vsyncpa [#allocation3], 0  ;;  %s875_s0 = inlined_call_operand.vmem [shape: bf16[8,128], index: 0, kind: input, shape index: {}]   ;;  %s876_s1 = inlined_call_operand.hbm [shape: bf16[128,128], index: 1, kind: input, shape index: {}]   ;;  %s877_s2 = inlined_call_operand.vmem [shape: f32[2,128], index: 2, kind: input, shape index: {}]   ;;  %s878_s3 = inlined_call_operand.hbm [shape: bf16[128,128], index: 3, kind: input, shape index: {}]   ;;  %s879_s4 = inlined_call_operand.vmem [shape: f32[3,128], index: 4, kind: input, shape index: {}]   ;;  %s880_s5 = inlined_call_operand.hbm [shape: bf16[128,128], index: 5, kind: input, shape index: {}]   ;;  %s881_s6 = inlined_call_operand.vmem [shape: f32[1,128], index: 6, kind: input, shape index: {}]   ;;  %s882_s7 = inlined_call_operand.hbm [shape: f32[8,128], index: 7, kind: output, shape index: {}]  }
   0x1   :  { %13 = vsyncpa [#allocation6], 0 }
   0x2   :  { %14 = vsyncpa [#allocation4], 0  ;;  %s712_s24 = smov [#allocation5]   ;;  %s713_s26 = smov [#allocation2]  }
   0x3   :  { %s36_s25 = sshll.u32 %s712_s24, 4  ;;  %s22_s27 = sshll.u32 %s713_s26, 4  ;;  %s37_s25 = int_to_ptr.vmem [resolvable:$true] %s36_s25  ;;  %s760_s27 = int_to_ptr.vmem [resolvable:$true] %s22_s27 }
   0x4   :  { %s618_s30 = scalar_lea.hbm %s878_s3, 1024 }
   0x5   :  { %p619_p0 = scmp.ne.s32.totalorder %s878_s3, %s618_s30  ;;  %p622_p1 = scmp.lt.u32.totalorder %s618_s30, %s878_s3 }
   0x7   :  { %p624_p2 = pnand %p622_p1, %p619_p0 }
   0x9   :  { %627 = shalt.err (!%p624_p2)
}
   0xa   :  { %s628_s12 = scalar_lea.vmem %s37_s25, 1024  ;;  %p633_p4 = scmp.lt.s32.totalorder %s37_s25, %s37_s25 }
   0xb   :  { %p629_p3 = scmp.ne.s32.totalorder %s37_s25, %s628_s12  ;;  %p634_p5 = scmp.lt.s32.totalorder %s628_s12, %s628_s12 }
   0xd   :  { %p635_p6 = por %p634_p5, %p633_p4 }
   0xf   :  { %p636_p7 = pnand %p635_p6, %p629_p3 }
  0x11   :  { %639 = shalt.err (!%p636_p7)
}
  0x12   :  { %s714_s13 = smov 64   ;;  %s715_s14 = smov 4  }
  0x13   :  { %42 = dma.hbm_to_vmem [thread:$0]  %s878_s3, 1024, %s37_s25, [#allocation6], %s714_s13, %s714_s13, %s715_s14  }
  0x14   :  { %s640_s19 = scalar_lea.hbm %s876_s1, 1024 }
  0x15   :  { %p641_p8 = scmp.ne.s32.totalorder %s876_s1, %s640_s19  ;;  %p644_p9 = scmp.lt.u32.totalorder %s640_s19, %s876_s1 }
  0x17   :  { %p646_p10 = pnand %p644_p9, %p641_p8 }
  0x19   :  { %649 = shalt.err (!%p646_p10)
}
  0x1a   :  { %s650_s24 = scalar_lea.vmem %s760_s27, 1024  ;;  %p655_p12 = scmp.lt.s32.totalorder %s760_s27, %s760_s27 }
  0x1b   :  { %p651_p11 = scmp.ne.s32.totalorder %s760_s27, %s650_s24  ;;  %p656_p13 = scmp.lt.s32.totalorder %s650_s24, %s650_s24 }
  0x1d   :  { %p657_p0 = por %p656_p13, %p655_p12 }
  0x1f   :  { %p658_p1 = pnand %p657_p0, %p651_p11 }
  0x21   :  { %661 = shalt.err (!%p658_p1)
}
  0x22   :  { %28 = dma.hbm_to_vmem [thread:$0]  %s876_s1, 1024, %s760_s27, [#allocation3], %s714_s13, %s714_s13, %s715_s14  }
  0x23   :  { %s716_s26 = smov [#allocation7]   ;;  %s662_s8 = scalar_lea.hbm %s880_s5, 1024 }
  0x24   :  { %s50_s28 = sshll.u32 %s716_s26, 4  ;;  %p663_p2 = scmp.ne.s32.totalorder %s880_s5, %s662_s8  ;;  %s51_s28 = int_to_ptr.vmem [resolvable:$true] %s50_s28 }
  0x25   :  { %p666_p3 = scmp.lt.u32.totalorder %s662_s8, %s880_s5 }
  0x27   :  { %p668_p4 = pnand %p666_p3, %p663_p2 }
  0x29   :  { %671 = shalt.err (!%p668_p4)
}
  0x2a   :  { %s672_s15 = scalar_lea.vmem %s51_s28, 1024  ;;  %p677_p6 = scmp.lt.s32.totalorder %s51_s28, %s51_s28 }
  0x2b   :  { %p673_p5 = scmp.ne.s32.totalorder %s51_s28, %s672_s15  ;;  %p678_p7 = scmp.lt.s32.totalorder %s672_s15, %s672_s15 }
  0x2d   :  { %p679_p8 = por %p678_p7, %p677_p6 }
  0x2f   :  { %p680_p9 = pnand %p679_p8, %p673_p5 }
  0x31   :  { %683 = shalt.err (!%p680_p9)
}
  0x32   :  { %56 = dma.hbm_to_vmem [thread:$0]  %s880_s5, 1024, %s51_s28, [#allocation6], %s714_s13, %s714_s13, %s715_s14  }
  0x33   :  { %706 = dma.done.wait [#allocation3], 1024  }
  0x34   :  { %707 = vsyncadd [#allocation3], 4294966272 }
  0x35   :  { %708 = dma.done.wait [#allocation6], 2048  }
  0x36   :  { %709 = vsyncadd [#allocation6], 4294965248  ;;  %v717_v0 = vmov 0.0   ;;  %vm718_vm0 = vmmov 0   ;;  %v588_v1 = vld [vmem:[#allocation2] sm:$0xff]   ;;  %v589_v2 = vld [vmem:[#allocation2 + $0x8] sm:$0xff]  }
  0x37   :  { %520 = vmatprep.subr.bf16.mxu0 %v717_v0  ;;  %536 = vmatprep.mubr.msk.bf16.mxu0 %vm718_vm0, %v717_v0  ;;  %v590_v3 = vld [vmem:[#allocation2 + $0x10] sm:$0xff]   ;;  %v591_v4 = vld [vmem:[#allocation2 + $0x18] sm:$0xff]   ;;  %v592_v5 = vld [vmem:[#allocation2 + $0x20] sm:$0xff]   ;;  %s719_s3 = smov [#allocation8]  }
  0x38   :  { %540 = vmatprep.subr.bf16.mxu1 %v717_v0  ;;  %556 = vmatprep.mubr.msk.bf16.mxu1 %vm718_vm0, %v717_v0  ;;  %v593_v6 = vld [vmem:[#allocation2 + $0x28] sm:$0xff]   ;;  %v594_v7 = vld [vmem:[#allocation2 + $0x30] sm:$0xff]   ;;  %v595_v8 = vld [vmem:[#allocation2 + $0x38] sm:$0xff]   ;;  %s453_s25 = sshll.u32 %s719_s3, 4  ;;  %s454_s25 = int_to_ptr.vmem [resolvable:$true] %s453_s25 }
  0x39   :  { %521 = vmatpush3.bf16.msra.mxu0 %v588_v1  ;;  %v69_v9 = vld [vmem:[%s875_s0] sm:$0xf]  ;;  %v597_v15 = vld [vmem:[#allocation5 + $0x8] sm:$0xff]   ;;  %v598_v20 = vld [vmem:[#allocation5 + $0x10] sm:$0xff]   ;;  %p689_p11 = scmp.lt.s32.totalorder %s454_s25, %s454_s25 }
  0x3a   :  { %522 = vmatprep.subr.bf16.mxu0 %v717_v0  ;;  %v596_v14 = vld [vmem:[#allocation5] sm:$0xff]   ;;  %v599_v21 = vld [vmem:[#allocation5 + $0x18] sm:$0xff]   ;;  %v601_v23 = vld [vmem:[#allocation5 + $0x28] sm:$0xff]  }
  0x3b   :  { %541 = vmatpush3.bf16.msra.mxu1 %v596_v14  ;;  %v600_v22 = vld [vmem:[#allocation5 + $0x20] sm:$0xff]   ;;  %v602_v24 = vld [vmem:[#allocation5 + $0x30] sm:$0xff]   ;;  %v603_v25 = vld [vmem:[#allocation5 + $0x38] sm:$0xff]  }
  0x3c   :  { %542 = vmatprep.subr.bf16.mxu1 %v717_v0  ;;  %v471_v29 = vld [vmem:[%s877_s2] ss:$0 sm:$0xff]  ;;  %v472_v32 = vld [vmem:[%s877_s2 + $0x1] ss:$0 sm:$0xff]  ;;  %v605_v44 = vld [vmem:[#allocation7 + $0x8] sm:$0xff]  }
  0x3d   :  { %523 = vmatpush3.bf16.msra.mxu0 %v589_v2  ;;  %v473_v37 = vld [vmem:[%s879_s4] ss:$0 sm:$0xff]  ;;  %v606_v49 = vld [vmem:[#allocation7 + $0x10] sm:$0xff]   ;;  %v607_v50 = vld [vmem:[#allocation7 + $0x18] sm:$0xff]  }
  0x3e   :  { %524 = vmatprep.subr.bf16.mxu0 %v717_v0  ;;  %v604_v43 = vld [vmem:[#allocation7] sm:$0xff]   ;;  %v609_v52 = vld [vmem:[#allocation7 + $0x28] sm:$0xff]   ;;  %v610_v53 = vld [vmem:[#allocation7 + $0x30] sm:$0xff]  }
  0x3f   :  { %543 = vmatpush3.bf16.msra.mxu1 %v597_v15  ;;  %v608_v51 = vld [vmem:[#allocation7 + $0x20] sm:$0xff]   ;;  %v611_v54 = vld [vmem:[#allocation7 + $0x38] sm:$0xff]  }
  0x40   :  { %544 = vmatprep.subr.bf16.mxu1 %v717_v0  ;;  %v482_v58 = vld [vmem:[%s879_s4 + $0x1] ss:$0 sm:$0xff]  ;;  %v483_v61 = vld [vmem:[%s879_s4 + $0x2] ss:$0 sm:$0xff]  ;;  %s684_s4 = scalar_lea.vmem %s454_s25, 128 }
  0x41   :  { %525 = vmatpush3.bf16.msra.mxu0 %v590_v3  ;;  %p685_p10 = scmp.ne.s32.totalorder %s454_s25, %s684_s4  ;;  %p690_p12 = scmp.lt.s32.totalorder %s684_s4, %s684_s4 }
  0x42   :  { %526 = vmatprep.subr.bf16.mxu0 %v717_v0 }
  0x43   :  { %545 = vmatpush3.bf16.msra.mxu1 %v598_v20  ;;  %p691_p13 = por %p690_p12, %p689_p11 }
  0x44   :  { %546 = vmatprep.subr.bf16.mxu1 %v717_v0 }
  0x45   :  { %527 = vmatpush3.bf16.msra.mxu0 %v591_v4  ;;  %p692_p0 = pnand %p691_p13, %p685_p10 }
  0x46   :  { %528 = vmatprep.subr.bf16.mxu0 %v717_v0 }
  0x47   :  { %547 = vmatpush3.bf16.msra.mxu1 %v599_v21 }
  0x48   :  { %548 = vmatprep.subr.bf16.mxu1 %v717_v0 }
  0x49   :  { %529 = vmatpush3.bf16.msra.mxu0 %v592_v5 }
  0x4a   :  { %530 = vmatprep.subr.bf16.mxu0 %v717_v0 }
  0x4b   :  { %549 = vmatpush3.bf16.msra.mxu1 %v600_v22 }
  0x4c   :  { %550 = vmatprep.subr.bf16.mxu1 %v717_v0 }
  0x4d   :  { %531 = vmatpush3.bf16.msra.mxu0 %v593_v6 }
  0x4e   :  { %532 = vmatprep.subr.bf16.mxu0 %v717_v0 }
  0x4f   :  { %551 = vmatpush3.bf16.msra.mxu1 %v601_v23 }
  0x50   :  { %552 = vmatprep.subr.bf16.mxu1 %v717_v0 }
  0x51   :  { %533 = vmatpush3.bf16.msra.mxu0 %v594_v7 }
  0x52   :  { %534 = vmatprep.subr.bf16.mxu0 %v717_v0 }
  0x53   :  { %553 = vmatpush3.bf16.msra.mxu1 %v602_v24 }
  0x54   :  { %554 = vmatprep.subr.bf16.mxu1 %v717_v0 }
  0x55   :  { %535 = vmatpush3.bf16.msra.mxu0 %v595_v8 }
  0x56   :  { %560 = vmatprep.subr.bf16.mxu0 %v717_v0 }
  0x57   :  { %555 = vmatpush3.bf16.msra.mxu1 %v603_v25 }
  0x58   :  { %537 = vmatmul.mubr.bf16.vlgmr.msra.gmra.mrb[0].mxu0 %v69_v9 }
  0x59   :  { %576 = vmatprep.mubr.msk.bf16.mxu0 %vm718_vm0, %v717_v0  ;;  %561 = vmatpush3.bf16.msra.mxu0 %v604_v43 }
  0x5a   :  { %562 = vmatprep.subr.bf16.mxu0 %v717_v0 }
  0x5d   :  { %563 = vmatpush3.bf16.msra.mxu0 %v605_v44 }
  0x5e   :  { %564 = vmatprep.subr.bf16.mxu0 %v717_v0 }
  0x61   :  { %565 = vmatpush3.bf16.msra.mxu0 %v606_v49 }
  0x62   :  { %566 = vmatprep.subr.bf16.mxu0 %v717_v0 }
  0x65   :  { %567 = vmatpush3.bf16.msra.mxu0 %v607_v50 }
  0x66   :  { %568 = vmatprep.subr.bf16.mxu0 %v717_v0 }
  0x69   :  { %569 = vmatpush3.bf16.msra.mxu0 %v608_v51 }
  0x6a   :  { %570 = vmatprep.subr.bf16.mxu0 %v717_v0 }
  0x6d   :  { %571 = vmatpush3.bf16.msra.mxu0 %v609_v52 }
  0x6e   :  { %572 = vmatprep.subr.bf16.mxu0 %v717_v0 }
  0x71   :  { %573 = vmatpush3.bf16.msra.mxu0 %v610_v53 }
  0x72   :  { %574 = vmatprep.subr.bf16.mxu0 %v717_v0  ;;  %v484_v0 = vld [vmem:[%s881_s6] ss:$0 sm:$0xff] }
  0x75   :  { %575 = vmatpush3.bf16.msra.mxu0 %v611_v54 }
 0x12b   :  { %v168_v10 = vpop.f32.mrb[0].mxu0 }
 0x12c   :  { %176 = vadd.xlane.f32.xlu0 %v168_v10  ;;  %v538_v11 = vpop.f32.mrb[1].mxu0 }
 0x12d   :  { %v171_v12 = vpop.f32.mrb[2].mxu0 }
 0x12e   :  { %v539_v13 = vpop.f32.mrb[3].mxu0 }
 0x1b9   :  { %v177_v16 = vpop.xlane.xlu0 %176 }
 0x1ba   :  { %v179_v17 = vmul.f32 0.0078125, %v177_v16 }
 0x1bc   :  { %v180_v18 = vsub.f32 %v168_v10, %v179_v17 }
 0x1be   :  { %v181_v19 = vmul.f32 %v180_v18, %v180_v18 }
 0x1c0   :  { %182 = vadd.xlane.f32.xlu0 %v181_v19 }
 0x24d   :  { %v183_v26 = vpop.xlane.xlu0 %182 }
 0x24e   :  { %v184_v27 = vmul.f32 0.0078125, %v183_v26 }
 0x250   :  { %v185_v28 = vadd.f32 1e-05, %v184_v27 }
 0x252   :  { %612 = vrsqrt.f32 %v185_v28 }
 0x25c   :  { %v613_v30 = vpop.eup %612 }
 0x25d   :  { %v191_v31 = vmul.f32 %v613_v30, %v471_v29 }
 0x25f   :  { %v192_v33 = vmul.f32 %v191_v31, %v180_v18 }
 0x261   :  { %v197_v34 = vadd.f32 %v472_v32, %v192_v33 }
 0x263   :  { %v198_v35 = vmax.f32 %v197_v34, 0.0 }
 0x265   :  { %v199_v36 = vpack.c.bf16 %v198_v35, %v198_v35 }
 0x267   :  { %557 = vmatmul.mubr.bf16.vlgmr.msra.gmra.mrb[0].mxu1 %v199_v36 }
 0x33a   :  { %v303_v38 = vpop.f32.mrb[0].mxu1 }
 0x33b   :  { %v304_v39 = vadd.f32 %v473_v37, %v303_v38  ;;  %v558_v40 = vpop.f32.mrb[1].mxu1 }
 0x33c   :  { %v306_v41 = vpop.f32.mrb[2].mxu1 }
 0x33d   :  { %311 = vadd.xlane.f32.xlu1 %v304_v39  ;;  %v559_v42 = vpop.f32.mrb[3].mxu1 }
 0x3ca   :  { %v312_v45 = vpop.xlane.xlu1 %311 }
 0x3cb   :  { %v313_v46 = vmul.f32 0.0078125, %v312_v45 }
 0x3cd   :  { %v314_v47 = vsub.f32 %v304_v39, %v313_v46 }
 0x3cf   :  { %v315_v48 = vmul.f32 %v314_v47, %v314_v47 }
 0x3d1   :  { %316 = vadd.xlane.f32.xlu1 %v315_v48 }
 0x45e   :  { %v317_v55 = vpop.xlane.xlu1 %316 }
 0x45f   :  { %v318_v56 = vmul.f32 0.0078125, %v317_v55 }
 0x461   :  { %v319_v57 = vadd.f32 1e-05, %v318_v56 }
 0x463   :  { %614 = vrsqrt.f32 %v319_v57 }
 0x46d   :  { %v615_v59 = vpop.eup %614 }
 0x46e   :  { %v325_v60 = vmul.f32 %v615_v59, %v482_v58 }
 0x470   :  { %v326_v62 = vmul.f32 %v325_v60, %v314_v47 }
 0x472   :  { %v331_v63 = vadd.f32 %v483_v61, %v326_v62 }
 0x474   :  { %v332_v1 = vmax.f32 %v331_v63, 0.0 }
 0x476   :  { %v333_v2 = vpack.c.bf16 %v332_v1, %v332_v1 }
 0x478   :  { %577 = vmatmul.mubr.bf16.vlgmr.msra.gmra.mrb[4].mxu0 %v333_v2 }
 0x54b   :  { %v439_v3 = vpop.f32.mrb[4].mxu0 }
 0x54c   :  { %v440_v4 = vadd.f32 %v484_v0, %v439_v3  ;;  %v578_v5 = vpop.f32.mrb[5].mxu0 }
 0x54d   :  { %v442_v6 = vpop.f32.mrb[6].mxu0 }
 0x54e   :  { %616 = vtanh.f32 %v440_v4  ;;  %v579_v7 = vpop.f32.mrb[7].mxu0 }
 0x558   :  { %v617_v8 = vpop.eup %616 }
 0x559   :  { %446 = vst [vmem:[#allocation8] sm:$0xff] %v617_v8 }
 0x55a   :  { %695 = shalt.err (!%p692_p0)
}
 0x55b   :  { %s696_s28 = scalar_lea.hbm %s882_s7, 128 }
 0x55c   :  { %p697_p1 = scmp.ne.s32.totalorder %s882_s7, %s696_s28  ;;  %p700_p2 = scmp.lt.u32.totalorder %s696_s28, %s882_s7 }
 0x55e   :  { %p702_p3 = pnand %p700_p2, %p697_p1 }
 0x560   :  { %705 = shalt.err (!%p702_p3)
}
 0x561   :  { %456 = dma.vmem_to_hbm [thread:$0]  %s454_s25, 128, %s882_s7, [#allocation4]  }
 0x562   :  { %710 = dma.done.wait [#allocation4], 128  }
 0x563   :  { %711 = vsyncadd [#allocation4], 4294967168 }
 0x564   :  { %460 = vsyncpa [#allocation3], 1 }
 0x565   :  { %461 = vsyncpa [#allocation6], 1 }
 0x566   :  { %462 = vsyncpa [#allocation4], 1 }

</bundles_post_ra>
